<compile_context>
chip_gen: v5e
topology: v5e:2x2
jax: 0.10.0
libtpu: 0.0.40
codegen_flags: <defaults>
</compile_context>

<pallas_src>
import functools

import jax
import jax.numpy as jnp
from jax.experimental import pallas as pl
from jax.experimental.pallas import tpu as pltpu


def _round_up(x, m):
    return ((x + m - 1) // m) * m


def _device_kind():
    try:
        return jax.devices()[0].device_kind.lower()
    except Exception:
        return ""


def _vmem_capacity_bytes():
    try:
        return int(pltpu.get_tpu_info().vmem_capacity_bytes)
    except Exception:
        return 64 * 1024 * 1024          # conservative (v7x per-TensorCore)


def _choose_tb(batch, tb_cap):
    """Batch tile: multiple of 16, <= tb_cap (VMEM budget) and <= 2048,
    minimizing padded rows; for large batches prefer >= 2 grid steps so the
    'parallel' axis actually shards across v7x's two TensorCores."""
    tb_cap = max(16, (min(int(tb_cap), 2048) // 16) * 16)
    if batch <= 32:
        return 16
    cands = {16, 32, 64, 128, 256, 512, 1024, 2048,
             _round_up(batch, 16), _round_up((batch + 1) // 2, 16)}
    cands = sorted(c for c in cands if 16 <= c <= tb_cap)
    if not cands:
        return 16
    best, best_key = None, None
    for tb in cands:
        b_pad = _round_up(batch, tb)
        steps = b_pad // tb
        waste = (b_pad - batch) / batch
        key = (waste > 0.125,                  # avoid gross row-padding waste
               batch >= 512 and steps < 2,     # keep both v7x TCs busy
               waste,                          # then least waste,
               -tb)                            # then biggest tile (fewer steps)
        if best_key is None or key < best_key:
            best, best_key = tb, key
    return best


def mlp_kernel(x_ref,
               w1_ref, b1_ref,
               w2_ref, b2_ref,
               w3_ref, b3_ref,
               w4_ref, b4_ref,
               o_ref, *, act_dtype):
    """One batch tile of the 4-layer MLP.  MXU matmuls use bf16 operands with
    f32 accumulation; bias+ReLU epilogue runs in `act_dtype` (bf16 on v6e/v7x,
    f32 on v5e)."""
    h = x_ref[...].astype(jnp.bfloat16)                       # (TB, F) f32 -> bf16
    for w_ref, b_ref in ((w1_ref, b1_ref), (w2_ref, b2_ref), (w3_ref, b3_ref)):
        z = jnp.dot(h, w_ref[...], preferred_element_type=jnp.float32)
        z = z.astype(act_dtype) + b_ref[...]                  # bias stored in act_dtype
        h = jnp.maximum(z, 0.0).astype(jnp.bfloat16)          # ReLU -> next MXU operand
    y = jnp.dot(h, w4_ref[...], preferred_element_type=jnp.float32) + b4_ref[...]
    o_ref[...] = y                                            # narrow (TB, n_output) f32


def net_forward(x, params):
    """x: (B, n_feature) float32. params: dict of (in,out) weights, (out,) biases."""
    B, n_feature = x.shape
    n_hidden = params["w1"].shape[1]
    n_output = params["w4"].shape[1]

    kind = _device_kind()
    newer_gen = any(t in kind for t in ("v6", "v7", "tpu7"))
    act_dtype = jnp.bfloat16 if newer_gen else jnp.float32    # bf16 VPU only on v6e/v7x

    # Hidden width padding: 128 lanes; 256 on v6e/v7x once it exceeds one tile
    # (their MXUs are 256x256).  Hidden activations never touch HBM, so this
    # padding is free on the streaming path.
    h_align = 256 if (newer_gen and n_hidden > 128) else 128
    H_pad = _round_up(n_hidden, h_align)

    # ---- VMEM budget -> batch-tile cap -------------------------------------
    capacity = _vmem_capacity_bytes()
    weight_elems = n_feature * H_pad + 2 * H_pad * H_pad + H_pad * n_output
    bias_bytes = 3 * H_pad * 4 + n_output * 4
    resident = 2 * (weight_elems * 2 + bias_bytes)            # x2: assume double-buffered
    per_row = 2 * 4 * n_feature + 2 * 4 * n_output + 24 * H_pad
    budget = int(0.7 * capacity) - resident
    tb_cap = max(16, budget // per_row)
    # TODO(synk): for n_hidden large enough that the two HxH weights alone blow
    # the VMEM budget (>= ~2048 on v7x's 64 MiB), tile them over a reduction
    # grid axis instead of keeping them fully resident.

    TB = _choose_tb(B, tb_cap)
    B_pad = _round_up(B, TB)

    # ---- Host-side prep: pad only resident tensors (and batch rows if needed)
    x_p = x if B_pad == B else jnp.pad(x, ((0, B_pad - B), (0, 0)))

    def pad2(a, rows, cols, dtype):
        return jnp.pad(a, ((0, rows - a.shape[0]), (0, cols - a.shape[1]))).astype(dtype)

    w1 = pad2(params["w1"], n_feature, H_pad, jnp.bfloat16)
    w2 = pad2(params["w2"], H_pad, H_pad, jnp.bfloat16)
    w3 = pad2(params["w3"], H_pad, H_pad, jnp.bfloat16)
    w4 = pad2(params["w4"], H_pad, n_output, jnp.bfloat16)
    b1 = pad2(params["b1"].reshape(1, -1), 1, H_pad, act_dtype)
    b2 = pad2(params["b2"].reshape(1, -1), 1, H_pad, act_dtype)
    b3 = pad2(params["b3"].reshape(1, -1), 1, H_pad, act_dtype)
    b4 = params["b4"].reshape(1, -1).astype(jnp.float32)

    args = (x_p, w1, b1, w2, b2, w3, b3, w4, b4)

    flops = 2 * B_pad * (n_feature * H_pad + 2 * H_pad * H_pad + H_pad * n_output)
    bytes_accessed = sum(int(a.size) * a.dtype.itemsize for a in args) \
        + B_pad * n_output * 4
    cost = pl.CostEstimate(flops=flops, transcendentals=0,
                           bytes_accessed=bytes_accessed)

    est_vmem = resident + TB * per_row + (4 << 20)
    vmem_limit = int(min(capacity * 9 // 10, max(32 << 20, est_vmem)))

    # Streamed blocks: x keeps its native feature width, output is narrow.
    x_spec = pl.BlockSpec((TB, n_feature), lambda i: (i, 0))
    o_spec = pl.BlockSpec((TB, n_output), lambda i: (i, 0))

    def build(single_buffer):
        def const2(a):
            kwargs = {}
            if single_buffer:
                # Constant-index resident blocks need only one VMEM buffer.
                kwargs["pipeline_mode"] = pl.Buffered(1)
            return pl.BlockSpec(a.shape, lambda i: (0, 0), **kwargs)

        in_specs = [x_spec,
                    const2(w1), const2(b1),
                    const2(w2), const2(b2),
                    const2(w3), const2(b3),
                    const2(w4), const2(b4)]
        return pl.pallas_call(
            functools.partial(mlp_kernel, act_dtype=act_dtype),
            out_shape=jax.ShapeDtypeStruct((B_pad, n_output), jnp.float32),
            grid_spec=pltpu.PrefetchScalarGridSpec(
                num_scalar_prefetch=0,
                grid=(B_pad // TB,),
                in_specs=in_specs,
                out_specs=o_spec,
            ),
            compiler_params=pltpu.CompilerParams(
                dimension_semantics=("parallel",),
                vmem_limit_bytes=vmem_limit),
            cost_estimate=cost,
        )

    try:
        out = build(single_buffer=True)(*args)
    except Exception:
        # pipeline_mode=pl.Buffered(1) not supported by this JAX build: fall
        # back to default double-buffering for the resident weights.
        out = build(single_buffer=False)(*args)

    return out[:B] if B_pad != B else out


def init_params(key, n_feature, n_hidden, n_output):
    """Deterministic init mimicking PyTorch Linear default (U[-1/sqrt(fan_in), +])."""
    def linear(key, fan_in, fan_out):
        kw, kb = jax.random.split(key)
        bound = 1.0 / jnp.sqrt(fan_in)
        w = jax.random.uniform(kw, (fan_in, fan_out), jnp.float32, -bound, bound)
        b = jax.random.uniform(kb, (fan_out,), jnp.float32, -bound, bound)
        return w, b

    k1, k2, k3, k4 = jax.random.split(key, 4)
    w1, b1 = linear(k1, n_feature, n_hidden)
    w2, b2 = linear(k2, n_hidden, n_hidden)
    w3, b3 = linear(k3, n_hidden, n_hidden)
    w4, b4 = linear(k4, n_hidden, n_output)
    return dict(w1=w1, b1=b1, w2=w2, b2=b2, w3=w3, b3=b3, w4=w4, b4=b4)


def net_forward_ref_f32(x, params):
    """Pure-JAX f32 reference for correctness checking."""
    h = jnp.maximum(x @ params["w1"] + params["b1"], 0.0)
    h = jnp.maximum(h @ params["w2"] + params["b2"], 0.0)
    h = jnp.maximum(h @ params["w3"] + params["b3"], 0.0)
    return h @ params["w4"] + params["b4"]


if __name__ == "__main__":
    n_feature, n_hidden, n_output = 4, 32, 2
    batch = 8

    key = jax.random.PRNGKey(0)
    kx, kp = jax.random.split(key)

    x = jax.random.normal(kx, (batch, n_feature), jnp.float32)
    params = init_params(kp, n_feature, n_hidden, n_output)

    out = net_forward(x, params)
    out = jax.block_until_ready(out)

    ref = net_forward_ref_f32(x, params)
    assert out.shape == (batch, n_output), out.shape
    # bf16 MXU operands / bf16 epilogue (on v6e/v7x) with f32 accumulation ->
    # loose tolerance vs the f32 reference.
    assert jnp.allclose(out, ref, atol=3e-2, rtol=3e-2), (
        "mismatch vs reference", float(jnp.max(jnp.abs(out - ref))))

    print("KERNEL_OK")
</pallas_src>

<mosaic_0001>
module attributes {stable_mosaic.version = 11 : i64} {
  func.func @mlp_kernel(%arg0: i32, %arg1: memref<16x4xf32, #tpu.memory_space<vmem>>, %arg2: memref<4x128xbf16, #tpu.memory_space<vmem>>, %arg3: memref<1x128xf32, #tpu.memory_space<vmem>>, %arg4: memref<128x128xbf16, #tpu.memory_space<vmem>>, %arg5: memref<1x128xf32, #tpu.memory_space<vmem>>, %arg6: memref<128x128xbf16, #tpu.memory_space<vmem>>, %arg7: memref<1x128xf32, #tpu.memory_space<vmem>>, %arg8: memref<128x2xbf16, #tpu.memory_space<vmem>>, %arg9: memref<1x2xf32, #tpu.memory_space<vmem>>, %arg10: memref<16x2xf32, #tpu.memory_space<vmem>>) attributes {dimension_semantics = [#tpu.dimension_semantics<parallel>], iteration_bounds = array<i64: 1>, scalar_prefetch = 0 : i64, scratch_operands = 0 : i64, tpu.core_type = #tpu.core_type<tc>, window_params = [{transform_indices = @transform_0, window_bounds = array<i64: 16, 4>}, {pipeline_mode = #tpu.pipeline_mode<synchronous>, transform_indices = @transform_1, window_bounds = array<i64: 4, 128>}, {pipeline_mode = #tpu.pipeline_mode<synchronous>, transform_indices = @transform_2, window_bounds = array<i64: 1, 128>}, {pipeline_mode = #tpu.pipeline_mode<synchronous>, transform_indices = @transform_3, window_bounds = array<i64: 128, 128>}, {pipeline_mode = #tpu.pipeline_mode<synchronous>, transform_indices = @transform_4, window_bounds = array<i64: 1, 128>}, {pipeline_mode = #tpu.pipeline_mode<synchronous>, transform_indices = @transform_5, window_bounds = array<i64: 128, 128>}, {pipeline_mode = #tpu.pipeline_mode<synchronous>, transform_indices = @transform_6, window_bounds = array<i64: 1, 128>}, {pipeline_mode = #tpu.pipeline_mode<synchronous>, transform_indices = @transform_7, window_bounds = array<i64: 128, 2>}, {pipeline_mode = #tpu.pipeline_mode<synchronous>, transform_indices = @transform_8, window_bounds = array<i64: 1, 2>}, {transform_indices = @transform_9, window_bounds = array<i64: 16, 2>}]} {
    %c0 = arith.constant 0 : index
    %c0_0 = arith.constant 0 : index
    %0 = vector.load %arg1[%c0, %c0_0] : memref<16x4xf32, #tpu.memory_space<vmem>>, vector<16x4xf32>
    %1 = arith.truncf %0 : vector<16x4xf32> to vector<16x4xbf16>
    %c0_1 = arith.constant 0 : index
    %c0_2 = arith.constant 0 : index
    %2 = vector.load %arg2[%c0_1, %c0_2] : memref<4x128xbf16, #tpu.memory_space<vmem>>, vector<4x128xbf16>
    %cst = arith.constant dense<0.000000e+00> : vector<16x128xf32>
    %3 = tpu.matmul %1, %2, %cst {dimension_numbers = #tpu.dot_dimension_numbers<[1], [0], [0], [1], [0, 0, 1, 1], [], []>} : vector<16x4xbf16>, vector<4x128xbf16>, vector<16x128xf32> -> vector<16x128xf32>
    %c0_3 = arith.constant 0 : index
    %c0_4 = arith.constant 0 : index
    %4 = vector.load %arg3[%c0_3, %c0_4] : memref<1x128xf32, #tpu.memory_space<vmem>>, vector<1x128xf32>
    %5 = vector.broadcast %4 : vector<1x128xf32> to vector<16x128xf32>
    %6 = arith.addf %3, %5 : vector<16x128xf32>
    %cst_5 = arith.constant 0.000000e+00 : f32
    %7 = vector.broadcast %cst_5 : f32 to vector<16x128xf32>
    %8 = arith.maximumf %6, %7 : vector<16x128xf32>
    %9 = arith.truncf %8 : vector<16x128xf32> to vector<16x128xbf16>
    %c0_6 = arith.constant 0 : index
    %c0_7 = arith.constant 0 : index
    %10 = vector.load %arg4[%c0_6, %c0_7] : memref<128x128xbf16, #tpu.memory_space<vmem>>, vector<128x128xbf16>
    %cst_8 = arith.constant dense<0.000000e+00> : vector<16x128xf32>
    %11 = tpu.matmul %9, %10, %cst_8 {dimension_numbers = #tpu.dot_dimension_numbers<[1], [0], [0], [1], [0, 0, 1, 1], [], []>} : vector<16x128xbf16>, vector<128x128xbf16>, vector<16x128xf32> -> vector<16x128xf32>
    %c0_9 = arith.constant 0 : index
    %c0_10 = arith.constant 0 : index
    %12 = vector.load %arg5[%c0_9, %c0_10] : memref<1x128xf32, #tpu.memory_space<vmem>>, vector<1x128xf32>
    %13 = vector.broadcast %12 : vector<1x128xf32> to vector<16x128xf32>
    %14 = arith.addf %11, %13 : vector<16x128xf32>
    %cst_11 = arith.constant 0.000000e+00 : f32
    %15 = vector.broadcast %cst_11 : f32 to vector<16x128xf32>
    %16 = arith.maximumf %14, %15 : vector<16x128xf32>
    %17 = arith.truncf %16 : vector<16x128xf32> to vector<16x128xbf16>
    %c0_12 = arith.constant 0 : index
    %c0_13 = arith.constant 0 : index
    %18 = vector.load %arg6[%c0_12, %c0_13] : memref<128x128xbf16, #tpu.memory_space<vmem>>, vector<128x128xbf16>
    %cst_14 = arith.constant dense<0.000000e+00> : vector<16x128xf32>
    %19 = tpu.matmul %17, %18, %cst_14 {dimension_numbers = #tpu.dot_dimension_numbers<[1], [0], [0], [1], [0, 0, 1, 1], [], []>} : vector<16x128xbf16>, vector<128x128xbf16>, vector<16x128xf32> -> vector<16x128xf32>
    %c0_15 = arith.constant 0 : index
    %c0_16 = arith.constant 0 : index
    %20 = vector.load %arg7[%c0_15, %c0_16] : memref<1x128xf32, #tpu.memory_space<vmem>>, vector<1x128xf32>
    %21 = vector.broadcast %20 : vector<1x128xf32> to vector<16x128xf32>
    %22 = arith.addf %19, %21 : vector<16x128xf32>
    %cst_17 = arith.constant 0.000000e+00 : f32
    %23 = vector.broadcast %cst_17 : f32 to vector<16x128xf32>
    %24 = arith.maximumf %22, %23 : vector<16x128xf32>
    %25 = arith.truncf %24 : vector<16x128xf32> to vector<16x128xbf16>
    %c0_18 = arith.constant 0 : index
    %c0_19 = arith.constant 0 : index
    %26 = vector.load %arg8[%c0_18, %c0_19] : memref<128x2xbf16, #tpu.memory_space<vmem>>, vector<128x2xbf16>
    %cst_20 = arith.constant dense<0.000000e+00> : vector<16x2xf32>
    %27 = tpu.matmul %25, %26, %cst_20 {dimension_numbers = #tpu.dot_dimension_numbers<[1], [0], [0], [1], [0, 0, 1, 1], [], []>} : vector<16x128xbf16>, vector<128x2xbf16>, vector<16x2xf32> -> vector<16x2xf32>
    %c0_21 = arith.constant 0 : index
    %c0_22 = arith.constant 0 : index
    %28 = vector.load %arg9[%c0_21, %c0_22] : memref<1x2xf32, #tpu.memory_space<vmem>>, vector<1x2xf32>
    %29 = vector.broadcast %28 : vector<1x2xf32> to vector<16x2xf32>
    %30 = arith.addf %27, %29 : vector<16x2xf32>
    %c0_23 = arith.constant 0 : index
    %c0_24 = arith.constant 0 : index
    %31 = vector.load %arg10[%c0_23, %c0_24] : memref<16x2xf32, #tpu.memory_space<vmem>>, vector<16x2xf32>
    tpu.vector_store %arg10[%c0_23, %c0_24], %30 {strides = array<i32>} : memref<16x2xf32, #tpu.memory_space<vmem>>, vector<16x2xf32>,
    return
  }
  func.func @transform_0(%arg0: i32) -> (i32, i32) {
    %c0_i32 = arith.constant 0 : i32
    %c0_i32_0 = arith.constant 0 : i32
    return %arg0, %c0_i32 : i32, i32
  }
  func.func @transform_1(%arg0: i32) -> (i32, i32) {
    %c0_i32 = arith.constant 0 : i32
    %c0_i32_0 = arith.constant 0 : i32
    %c0_i32_1 = arith.constant 0 : i32
    return %c0_i32, %c0_i32_0 : i32, i32
  }
  func.func @transform_2(%arg0: i32) -> (i32, i32) {
    %c0_i32 = arith.constant 0 : i32
    %c0_i32_0 = arith.constant 0 : i32
    %c0_i32_1 = arith.constant 0 : i32
    return %c0_i32, %c0_i32_0 : i32, i32
  }
  func.func @transform_3(%arg0: i32) -> (i32, i32) {
    %c0_i32 = arith.constant 0 : i32
    %c0_i32_0 = arith.constant 0 : i32
    %c0_i32_1 = arith.constant 0 : i32
    return %c0_i32, %c0_i32_0 : i32, i32
  }
  func.func @transform_4(%arg0: i32) -> (i32, i32) {
    %c0_i32 = arith.constant 0 : i32
    %c0_i32_0 = arith.constant 0 : i32
    %c0_i32_1 = arith.constant 0 : i32
    return %c0_i32, %c0_i32_0 : i32, i32
  }
  func.func @transform_5(%arg0: i32) -> (i32, i32) {
    %c0_i32 = arith.constant 0 : i32
    %c0_i32_0 = arith.constant 0 : i32
    %c0_i32_1 = arith.constant 0 : i32
    return %c0_i32, %c0_i32_0 : i32, i32
  }
  func.func @transform_6(%arg0: i32) -> (i32, i32) {
    %c0_i32 = arith.constant 0 : i32
    %c0_i32_0 = arith.constant 0 : i32
    %c0_i32_1 = arith.constant 0 : i32
    return %c0_i32, %c0_i32_0 : i32, i32
  }
  func.func @transform_7(%arg0: i32) -> (i32, i32) {
    %c0_i32 = arith.constant 0 : i32
    %c0_i32_0 = arith.constant 0 : i32
    %c0_i32_1 = arith.constant 0 : i32
    return %c0_i32, %c0_i32_0 : i32, i32
  }
  func.func @transform_8(%arg0: i32) -> (i32, i32) {
    %c0_i32 = arith.constant 0 : i32
    %c0_i32_0 = arith.constant 0 : i32
    %c0_i32_1 = arith.constant 0 : i32
    return %c0_i32, %c0_i32_0 : i32, i32
  }
  func.func @transform_9(%arg0: i32) -> (i32, i32) {
    %c0_i32 = arith.constant 0 : i32
    %c0_i32_0 = arith.constant 0 : i32
    return %arg0, %c0_i32 : i32, i32
  }
}

module attributes {stable_mosaic.version = 11 : i64} {
  func.func @mlp_kernel(%arg0: i32, %arg1: memref<16x4xf32, #tpu.memory_space<vmem>>, %arg2: memref<4x128xbf16, #tpu.memory_space<vmem>>, %arg3: memref<1x128xf32, #tpu.memory_space<vmem>>, %arg4: memref<128x128xbf16, #tpu.memory_space<vmem>>, %arg5: memref<1x128xf32, #tpu.memory_space<vmem>>, %arg6: memref<128x128xbf16, #tpu.memory_space<vmem>>, %arg7: memref<1x128xf32, #tpu.memory_space<vmem>>, %arg8: memref<128x2xbf16, #tpu.memory_space<vmem>>, %arg9: memref<1x2xf32, #tpu.memory_space<vmem>>, %arg10: memref<16x2xf32, #tpu.memory_space<vmem>>) attributes {dimension_semantics = [#tpu.dimension_semantics<parallel>], iteration_bounds = array<i64: 1>, scalar_prefetch = 0 : i64, scratch_operands = 0 : i64, tpu.core_type = #tpu.core_type<tc>, window_params = [{transform_indices = @transform_0, window_bounds = array<i64: 16, 4>}, {pipeline_mode = #tpu.pipeline_mode<synchronous>, transform_indices = @transform_1, window_bounds = array<i64: 4, 128>}, {pipeline_mode = #tpu.pipeline_mode<synchronous>, transform_indices = @transform_2, window_bounds = array<i64: 1, 128>}, {pipeline_mode = #tpu.pipeline_mode<synchronous>, transform_indices = @transform_3, window_bounds = array<i64: 128, 128>}, {pipeline_mode = #tpu.pipeline_mode<synchronous>, transform_indices = @transform_4, window_bounds = array<i64: 1, 128>}, {pipeline_mode = #tpu.pipeline_mode<synchronous>, transform_indices = @transform_5, window_bounds = array<i64: 128, 128>}, {pipeline_mode = #tpu.pipeline_mode<synchronous>, transform_indices = @transform_6, window_bounds = array<i64: 1, 128>}, {pipeline_mode = #tpu.pipeline_mode<synchronous>, transform_indices = @transform_7, window_bounds = array<i64: 128, 2>}, {pipeline_mode = #tpu.pipeline_mode<synchronous>, transform_indices = @transform_8, window_bounds = array<i64: 1, 2>}, {transform_indices = @transform_9, window_bounds = array<i64: 16, 2>}]} {
    %c0 = arith.constant 0 : index
    %c0_0 = arith.constant 0 : index
    %0 = vector.load %arg1[%c0, %c0_0] : memref<16x4xf32, #tpu.memory_space<vmem>>, vector<16x4xf32>
    %1 = arith.truncf %0 : vector<16x4xf32> to vector<16x4xbf16>
    %c0_1 = arith.constant 0 : index
    %c0_2 = arith.constant 0 : index
    %2 = vector.load %arg2[%c0_1, %c0_2] : memref<4x128xbf16, #tpu.memory_space<vmem>>, vector<4x128xbf16>
    %cst = arith.constant dense<0.000000e+00> : vector<16x128xf32>
    %3 = tpu.matmul %1, %2, %cst {dimension_numbers = #tpu.dot_dimension_numbers<[1], [0], [0], [1], [0, 0, 1, 1], [], []>} : vector<16x4xbf16>, vector<4x128xbf16>, vector<16x128xf32> -> vector<16x128xf32>
    %c0_3 = arith.constant 0 : index
    %c0_4 = arith.constant 0 : index
    %4 = vector.load %arg3[%c0_3, %c0_4] : memref<1x128xf32, #tpu.memory_space<vmem>>, vector<1x128xf32>
    %5 = vector.broadcast %4 : vector<1x128xf32> to vector<16x128xf32>
    %6 = arith.addf %3, %5 : vector<16x128xf32>
    %cst_5 = arith.constant 0.000000e+00 : f32
    %7 = vector.broadcast %cst_5 : f32 to vector<16x128xf32>
    %8 = arith.maximumf %6, %7 : vector<16x128xf32>
    %9 = arith.truncf %8 : vector<16x128xf32> to vector<16x128xbf16>
    %c0_6 = arith.constant 0 : index
    %c0_7 = arith.constant 0 : index
    %10 = vector.load %arg4[%c0_6, %c0_7] : memref<128x128xbf16, #tpu.memory_space<vmem>>, vector<128x128xbf16>
    %cst_8 = arith.constant dense<0.000000e+00> : vector<16x128xf32>
    %11 = tpu.matmul %9, %10, %cst_8 {dimension_numbers = #tpu.dot_dimension_numbers<[1], [0], [0], [1], [0, 0, 1, 1], [], []>} : vector<16x128xbf16>, vector<128x128xbf16>, vector<16x128xf32> -> vector<16x128xf32>
    %c0_9 = arith.constant 0 : index
    %c0_10 = arith.constant 0 : index
    %12 = vector.load %arg5[%c0_9, %c0_10] : memref<1x128xf32, #tpu.memory_space<vmem>>, vector<1x128xf32>
    %13 = vector.broadcast %12 : vector<1x128xf32> to vector<16x128xf32>
    %14 = arith.addf %11, %13 : vector<16x128xf32>
    %cst_11 = arith.constant 0.000000e+00 : f32
    %15 = vector.broadcast %cst_11 : f32 to vector<16x128xf32>
    %16 = arith.maximumf %14, %15 : vector<16x128xf32>
    %17 = arith.truncf %16 : vector<16x128xf32> to vector<16x128xbf16>
    %c0_12 = arith.constant 0 : index
    %c0_13 = arith.constant 0 : index
    %18 = vector.load %arg6[%c0_12, %c0_13] : memref<128x128xbf16, #tpu.memory_space<vmem>>, vector<128x128xbf16>
    %cst_14 = arith.constant dense<0.000000e+00> : vector<16x128xf32>
    %19 = tpu.matmul %17, %18, %cst_14 {dimension_numbers = #tpu.dot_dimension_numbers<[1], [0], [0], [1], [0, 0, 1, 1], [], []>} : vector<16x128xbf16>, vector<128x128xbf16>, vector<16x128xf32> -> vector<16x128xf32>
    %c0_15 = arith.constant 0 : index
    %c0_16 = arith.constant 0 : index
    %20 = vector.load %arg7[%c0_15, %c0_16] : memref<1x128xf32, #tpu.memory_space<vmem>>, vector<1x128xf32>
    %21 = vector.broadcast %20 : vector<1x128xf32> to vector<16x128xf32>
    %22 = arith.addf %19, %21 : vector<16x128xf32>
    %cst_17 = arith.constant 0.000000e+00 : f32
    %23 = vector.broadcast %cst_17 : f32 to vector<16x128xf32>
    %24 = arith.maximumf %22, %23 : vector<16x128xf32>
    %25 = arith.truncf %24 : vector<16x128xf32> to vector<16x128xbf16>
    %c0_18 = arith.constant 0 : index
    %c0_19 = arith.constant 0 : index
    %26 = vector.load %arg8[%c0_18, %c0_19] : memref<128x2xbf16, #tpu.memory_space<vmem>>, vector<128x2xbf16>
    %cst_20 = arith.constant dense<0.000000e+00> : vector<16x2xf32>
    %27 = tpu.matmul %25, %26, %cst_20 {dimension_numbers = #tpu.dot_dimension_numbers<[1], [0], [0], [1], [0, 0, 1, 1], [], []>} : vector<16x128xbf16>, vector<128x2xbf16>, vector<16x2xf32> -> vector<16x2xf32>
    %c0_21 = arith.constant 0 : index
    %c0_22 = arith.constant 0 : index
    %28 = vector.load %arg9[%c0_21, %c0_22] : memref<1x2xf32, #tpu.memory_space<vmem>>, vector<1x2xf32>
    %29 = vector.broadcast %28 : vector<1x2xf32> to vector<16x2xf32>
    %30 = arith.addf %27, %29 : vector<16x2xf32>
    %c0_23 = arith.constant 0 : index
    %c0_24 = arith.constant 0 : index
    %31 = vector.load %arg10[%c0_23, %c0_24] : memref<16x2xf32, #tpu.memory_space<vmem>>, vector<16x2xf32>
    tpu.vector_store %arg10[%c0_23, %c0_24], %30 {strides = array<i32>} : memref<16x2xf32, #tpu.memory_space<vmem>>, vector<16x2xf32>,
    return
  }
  func.func @transform_0(%arg0: i32) -> (i32, i32) {
    %c0_i32 = arith.constant 0 : i32
    %c0_i32_0 = arith.constant 0 : i32
    return %arg0, %c0_i32 : i32, i32
  }
  func.func @transform_1(%arg0: i32) -> (i32, i32) {
    %c0_i32 = arith.constant 0 : i32
    %c0_i32_0 = arith.constant 0 : i32
    %c0_i32_1 = arith.constant 0 : i32
    return %c0_i32, %c0_i32_0 : i32, i32
  }
  func.func @transform_2(%arg0: i32) -> (i32, i32) {
    %c0_i32 = arith.constant 0 : i32
    %c0_i32_0 = arith.constant 0 : i32
    %c0_i32_1 = arith.constant 0 : i32
    return %c0_i32, %c0_i32_0 : i32, i32
  }
  func.func @transform_3(%arg0: i32) -> (i32, i32) {
    %c0_i32 = arith.constant 0 : i32
    %c0_i32_0 = arith.constant 0 : i32
    %c0_i32_1 = arith.constant 0 : i32
    return %c0_i32, %c0_i32_0 : i32, i32
  }
  func.func @transform_4(%arg0: i32) -> (i32, i32) {
    %c0_i32 = arith.constant 0 : i32
    %c0_i32_0 = arith.constant 0 : i32
    %c0_i32_1 = arith.constant 0 : i32
    return %c0_i32, %c0_i32_0 : i32, i32
  }
  func.func @transform_5(%arg0: i32) -> (i32, i32) {
    %c0_i32 = arith.constant 0 : i32
    %c0_i32_0 = arith.constant 0 : i32
    %c0_i32_1 = arith.constant 0 : i32
    return %c0_i32, %c0_i32_0 : i32, i32
  }
  func.func @transform_6(%arg0: i32) -> (i32, i32) {
    %c0_i32 = arith.constant 0 : i32
    %c0_i32_0 = arith.constant 0 : i32
    %c0_i32_1 = arith.constant 0 : i32
    return %c0_i32, %c0_i32_0 : i32, i32
  }
  func.func @transform_7(%arg0: i32) -> (i32, i32) {
    %c0_i32 = arith.constant 0 : i32
    %c0_i32_0 = arith.constant 0 : i32
    %c0_i32_1 = arith.constant 0 : i32
    return %c0_i32, %c0_i32_0 : i32, i32
  }
  func.func @transform_8(%arg0: i32) -> (i32, i32) {
    %c0_i32 = arith.constant 0 : i32
    %c0_i32_0 = arith.constant 0 : i32
    %c0_i32_1 = arith.constant 0 : i32
    return %c0_i32, %c0_i32_0 : i32, i32
  }
  func.func @transform_9(%arg0: i32) -> (i32, i32) {
    %c0_i32 = arith.constant 0 : i32
    %c0_i32_0 = arith.constant 0 : i32
    return %arg0, %c0_i32 : i32, i32
  }
}

</mosaic_0001>

<bundles_post_ra>
// kernel: tpu_custom_call.1
= control target key start
LH: loop header
LB: loop body
LE: loop exit
PB: predicated region body
PF: predicated region fallthrough
CT: control target
= control target key end

     0   :  { %14 = vsyncpa [#allocation3], 0  ;;  %s496_s12 = smov [#allocation2]   ;;  %s497_s14 = smov 64   ;;  %s627_s0 = inlined_call_operand.vmem [shape: f32[16,4], index: 0, kind: input, shape index: {}]   ;;  %s628_s1 = inlined_call_operand.vmem [shape: bf16[4,128], index: 1, kind: input, shape index: {}]   ;;  %s629_s2 = inlined_call_operand.vmem [shape: f32[1,128], index: 2, kind: input, shape index: {}]   ;;  %s630_s3 = inlined_call_operand.vmem [shape: bf16[128,128], index: 3, kind: input, shape index: {}]   ;;  %s631_s4 = inlined_call_operand.vmem [shape: f32[1,128], index: 4, kind: input, shape index: {}]   ;;  %s632_s5 = inlined_call_operand.hbm [shape: bf16[128,128], index: 5, kind: input, shape index: {}]   ;;  %s633_s6 = inlined_call_operand.vmem [shape: f32[1,128], index: 6, kind: input, shape index: {}]   ;;  %s634_s7 = inlined_call_operand.vmem [shape: bf16[128,2], index: 7, kind: input, shape index: {}]   ;;  %s635_s8 = inlined_call_operand.vmem [shape: f32[1,2], index: 8, kind: input, shape index: {}]   ;;  %s636_s9 = inlined_call_operand.vmem [shape: f32[16,2], index: 9, kind: output, shape index: {}]  }
   0x1   :  { %s29_s11 = sshll.u32 %s632_s5, 4  ;;  %s31_s13 = sshll.u32 %s496_s12, 4  ;;  %s30_s11 = int_to_ptr.hbm [resolvable:$true] %s29_s11  ;;  %s32_s13 = int_to_ptr.vmem [resolvable:$true] %s31_s13 }
   0x2   :  { %s498_s15 = smov 4  }
   0x3   :  { %37 = dma.hbm_to_vmem [thread:$0]  %s30_s11, 1024, %s32_s13, [#allocation3], %s497_s14, %s497_s14, %s498_s15  }
   0x4   :  { %494 = dma.done.wait [#allocation3], 1024  }
   0x5   :  { %495 = vsyncadd [#allocation3], 4294966272  ;;  %vm61_vm0 = vcmask 1041408   ;;  %v52_v0 = vld [vmem:[%s628_s1] sm:$0x3]  ;;  %v50_v2 = vld [vmem:[%s627_s0 + $0x8] sm:$0xff] }
   0x6   :  { %v49_v1 = vld [vmem:[%s627_s0] sm:$0xff]  ;;  %v63_v3 = vsel %vm61_vm0, %v52_v0, 0  ;;  %v446_v5 = vld [vmem:[%s630_s3 + $0x38] sm:$0xff]  ;;  %vm57_vm1 = vcmask 31744   ;;  %v445_v6 = vld [vmem:[%s630_s3 + $0x30] sm:$0xff]  ;;  %vm334_vm2 = vcmask 15360  }
   0x7   :  { %v51_v4 = vpack.c.bf16 %v50_v2, %v49_v1  ;;  %72 = vmatpush.bf16.msra.mxu0 %v63_v3  ;;  %150 = vmatpush.bf16.msra.mxu1 %v446_v5  ;;  %v444_v7 = vld [vmem:[%s630_s3 + $0x28] sm:$0xff]  ;;  %v443_v8 = vld [vmem:[%s630_s3 + $0x20] sm:$0xff]  ;;  %v442_v9 = vld [vmem:[%s630_s3 + $0x18] sm:$0xff] }
   0x8   :  { %v441_v10 = vld [vmem:[%s630_s3 + $0x10] sm:$0xff]  ;;  %v440_v11 = vld [vmem:[%s630_s3 + $0x8] sm:$0xff]  ;;  %v439_v12 = vld [vmem:[%s630_s3] sm:$0xff] }
   0x9   :  { %v454_v13 = vld [vmem:[#allocation2 + $0x38] sm:$0xff]  ;;  %v453_v14 = vld [vmem:[#allocation2 + $0x30] sm:$0xff]  ;;  %v452_v15 = vld [vmem:[#allocation2 + $0x28] sm:$0xff] }
   0xa   :  { %342 = vmatmul.msk.bf16.vlgmr.msra.gmra.mxu0 %vm57_vm1, %v51_v4  ;;  %235 = vmatpush.bf16.msra.mxu2 %v454_v13  ;;  %v451_v16 = vld [vmem:[#allocation2 + $0x20] sm:$0xff]  ;;  %v450_v25 = vld [vmem:[#allocation2 + $0x18] sm:$0xff]  ;;  %v449_v26 = vld [vmem:[#allocation2 + $0x10] sm:$0xff] }
   0xb   :  { %151 = vmatpush.bf16.msra.mxu1 %v445_v6  ;;  %v466_v18 = vld [vmem:[%s629_s2] ss:$0 sm:$0xff]  ;;  %v448_v27 = vld [vmem:[#allocation2 + $0x8] sm:$0xff]  ;;  %v462_v29 = vld [vmem:[%s634_s7 + $0x38] sm:$0xff] }
   0xc   :  { %v447_v28 = vld [vmem:[#allocation2] sm:$0xff]  ;;  %320 = vmatpush.bf16.msra.mxu3 %v462_v29  ;;  %v461_v30 = vld [vmem:[%s634_s7 + $0x30] sm:$0xff]  ;;  %v460_v31 = vld [vmem:[%s634_s7 + $0x28] sm:$0xff] }
   0xd   :  { %v459_v32 = vld [vmem:[%s634_s7 + $0x20] sm:$0xff]  ;;  %v458_v41 = vld [vmem:[%s634_s7 + $0x18] sm:$0xff]  ;;  %v457_v42 = vld [vmem:[%s634_s7 + $0x10] sm:$0xff] }
   0xe   :  { %236 = vmatpush.bf16.msra.mxu2 %v453_v14  ;;  %v467_v34 = vld [vmem:[%s631_s4] ss:$0 sm:$0xff]  ;;  %v456_v43 = vld [vmem:[%s634_s7 + $0x8] sm:$0xff] }
   0xf   :  { %152 = vmatpush.bf16.msra.mxu1 %v444_v7  ;;  %v455_v44 = vld [vmem:[%s634_s7] sm:$0xff] }
  0x10   :  { %321 = vmatpush.bf16.msra.mxu3 %v461_v30  ;;  %v468_v46 = vld [vmem:[%s633_s6] ss:$0 sm:$0xff] }
  0x11   :  { %v469_v53 = vld [vmem:[%s635_s8] ss:$0 sm:$0xff] }
  0x12   :  { %237 = vmatpush.bf16.msra.mxu2 %v452_v15 }
  0x13   :  { %153 = vmatpush.bf16.msra.mxu1 %v443_v8 }
  0x14   :  { %322 = vmatpush.bf16.msra.mxu3 %v460_v31 }
  0x16   :  { %238 = vmatpush.bf16.msra.mxu2 %v451_v16 }
  0x17   :  { %154 = vmatpush.bf16.msra.mxu1 %v442_v9 }
  0x18   :  { %323 = vmatpush.bf16.msra.mxu3 %v459_v32 }
  0x1a   :  { %239 = vmatpush.bf16.msra.mxu2 %v450_v25 }
  0x1b   :  { %155 = vmatpush.bf16.msra.mxu1 %v441_v10 }
  0x1c   :  { %324 = vmatpush.bf16.msra.mxu3 %v458_v41 }
  0x1e   :  { %240 = vmatpush.bf16.msra.mxu2 %v449_v26 }
  0x1f   :  { %156 = vmatpush.bf16.msra.mxu1 %v440_v11 }
  0x20   :  { %325 = vmatpush.bf16.msra.mxu3 %v457_v42 }
  0x22   :  { %241 = vmatpush.bf16.msra.mxu2 %v448_v27 }
  0x23   :  { %157 = vmatpush.bf16.msra.mxu1 %v439_v12 }
  0x24   :  { %326 = vmatpush.bf16.msra.mxu3 %v456_v43 }
  0x26   :  { %242 = vmatpush.bf16.msra.mxu2 %v447_v28 }
  0x28   :  { %327 = vmatpush.bf16.msra.mxu3 %v455_v44 }
  0x87   :  { %v74_v17 = vpop.f32.mrf.mxu0 }
  0x88   :  { %v75_v19 = vadd.f32 %v466_v18, %v74_v17 }
  0x8a   :  { %v79_v22 = vmax.f32 %v75_v19, 0.0 }
  0x8f   :  { %v76_v20 = vpop.f32.mrf.mxu0 }
  0x90   :  { %v77_v21 = vadd.f32 %v466_v18, %v76_v20 }
  0x92   :  { %v80_v23 = vmax.f32 %v77_v21, 0.0 }
  0x94   :  { %v81_v24 = vpack.c.bf16 %v80_v23, %v79_v22 }
  0x96   :  { %158 = vmatmul.bf16.vlgmr.msra.gmra.mxu1 %v81_v24 }
 0x113   :  { %v159_v33 = vpop.f32.mrf.mxu1 }
 0x114   :  { %v160_v35 = vadd.f32 %v467_v34, %v159_v33 }
 0x116   :  { %v164_v38 = vmax.f32 %v160_v35, 0.0 }
 0x11b   :  { %v161_v36 = vpop.f32.mrf.mxu1 }
 0x11c   :  { %v162_v37 = vadd.f32 %v467_v34, %v161_v36 }
 0x11e   :  { %v165_v39 = vmax.f32 %v162_v37, 0.0 }
 0x120   :  { %v166_v40 = vpack.c.bf16 %v165_v39, %v164_v38 }
 0x122   :  { %243 = vmatmul.bf16.vlgmr.msra.gmra.mxu2 %v166_v40 }
 0x1a5   :  { %v244_v45 = vpop.f32.mrf.mxu2 }
 0x1a6   :  { %v245_v47 = vadd.f32 %v468_v46, %v244_v45 }
 0x1a8   :  { %v249_v50 = vmax.f32 %v245_v47, 0.0 }
 0x1ad   :  { %v246_v48 = vpop.f32.mrf.mxu2 }
 0x1ae   :  { %v247_v49 = vadd.f32 %v468_v46, %v246_v48 }
 0x1b0   :  { %v250_v51 = vmax.f32 %v247_v49, 0.0 }
 0x1b2   :  { %v251_v52 = vpack.c.bf16 %v250_v51, %v249_v50 }
 0x1b4   :  { %328 = vmatmul.bf16.vlgmr.msra.gmra.mxu3 %v251_v52 }
 0x237   :  { %v329_v54 = vpop.f32.mrf.mxu3 }
 0x238   :  { %v330_v55 = vadd.f32 %v469_v53, %v329_v54 }
 0x23a   :  { %335 = vst.msk [vmem:[%s636_s9] sm:$0xff] %vm334_vm2, %v330_v55 }
 0x23f   :  { %v331_v56 = vpop.f32.mrf.mxu3 }
 0x240   :  { %v332_v57 = vadd.f32 %v469_v53, %v331_v56 }
 0x242   :  { %336 = vst.msk [vmem:[%s636_s9 + $0x8] sm:$0xff] %vm334_vm2, %v332_v57 }
 0x243   :  { %341 = vsyncpa [#allocation3], 1 }

// kernel: tpu_custom_call.1
= control target key start
LH: loop header
LB: loop body
LE: loop exit
PB: predicated region body
PF: predicated region fallthrough
CT: control target
= control target key end

     0   :  { %14 = vsyncpa [#allocation3], 0  ;;  %s496_s12 = smov [#allocation2]   ;;  %s497_s14 = smov 64   ;;  %s627_s0 = inlined_call_operand.vmem [shape: f32[16,4], index: 0, kind: input, shape index: {}]   ;;  %s628_s1 = inlined_call_operand.vmem [shape: bf16[4,128], index: 1, kind: input, shape index: {}]   ;;  %s629_s2 = inlined_call_operand.vmem [shape: f32[1,128], index: 2, kind: input, shape index: {}]   ;;  %s630_s3 = inlined_call_operand.vmem [shape: bf16[128,128], index: 3, kind: input, shape index: {}]   ;;  %s631_s4 = inlined_call_operand.vmem [shape: f32[1,128], index: 4, kind: input, shape index: {}]   ;;  %s632_s5 = inlined_call_operand.hbm [shape: bf16[128,128], index: 5, kind: input, shape index: {}]   ;;  %s633_s6 = inlined_call_operand.vmem [shape: f32[1,128], index: 6, kind: input, shape index: {}]   ;;  %s634_s7 = inlined_call_operand.vmem [shape: bf16[128,2], index: 7, kind: input, shape index: {}]   ;;  %s635_s8 = inlined_call_operand.vmem [shape: f32[1,2], index: 8, kind: input, shape index: {}]   ;;  %s636_s9 = inlined_call_operand.vmem [shape: f32[16,2], index: 9, kind: output, shape index: {}]  }
   0x1   :  { %s29_s11 = sshll.u32 %s632_s5, 4  ;;  %s31_s13 = sshll.u32 %s496_s12, 4  ;;  %s30_s11 = int_to_ptr.hbm [resolvable:$true] %s29_s11  ;;  %s32_s13 = int_to_ptr.vmem [resolvable:$true] %s31_s13 }
   0x2   :  { %s498_s15 = smov 4  }
   0x3   :  { %37 = dma.hbm_to_vmem [thread:$0]  %s30_s11, 1024, %s32_s13, [#allocation3], %s497_s14, %s497_s14, %s498_s15  }
   0x4   :  { %494 = dma.done.wait [#allocation3], 1024  }
   0x5   :  { %495 = vsyncadd [#allocation3], 4294966272  ;;  %vm61_vm0 = vcmask 1041408   ;;  %v52_v0 = vld [vmem:[%s628_s1] sm:$0x3]  ;;  %v50_v2 = vld [vmem:[%s627_s0 + $0x8] sm:$0xff] }
   0x6   :  { %v49_v1 = vld [vmem:[%s627_s0] sm:$0xff]  ;;  %v63_v3 = vsel %vm61_vm0, %v52_v0, 0  ;;  %v446_v5 = vld [vmem:[%s630_s3 + $0x38] sm:$0xff]  ;;  %vm57_vm1 = vcmask 31744   ;;  %v445_v6 = vld [vmem:[%s630_s3 + $0x30] sm:$0xff]  ;;  %vm334_vm2 = vcmask 15360  }
   0x7   :  { %v51_v4 = vpack.c.bf16 %v50_v2, %v49_v1  ;;  %72 = vmatpush.bf16.msra.mxu0 %v63_v3  ;;  %150 = vmatpush.bf16.msra.mxu1 %v446_v5  ;;  %v444_v7 = vld [vmem:[%s630_s3 + $0x28] sm:$0xff]  ;;  %v443_v8 = vld [vmem:[%s630_s3 + $0x20] sm:$0xff]  ;;  %v442_v9 = vld [vmem:[%s630_s3 + $0x18] sm:$0xff] }
   0x8   :  { %v441_v10 = vld [vmem:[%s630_s3 + $0x10] sm:$0xff]  ;;  %v440_v11 = vld [vmem:[%s630_s3 + $0x8] sm:$0xff]  ;;  %v439_v12 = vld [vmem:[%s630_s3] sm:$0xff] }
   0x9   :  { %v454_v13 = vld [vmem:[#allocation2 + $0x38] sm:$0xff]  ;;  %v453_v14 = vld [vmem:[#allocation2 + $0x30] sm:$0xff]  ;;  %v452_v15 = vld [vmem:[#allocation2 + $0x28] sm:$0xff] }
   0xa   :  { %342 = vmatmul.msk.bf16.vlgmr.msra.gmra.mxu0 %vm57_vm1, %v51_v4  ;;  %235 = vmatpush.bf16.msra.mxu2 %v454_v13  ;;  %v451_v16 = vld [vmem:[#allocation2 + $0x20] sm:$0xff]  ;;  %v450_v25 = vld [vmem:[#allocation2 + $0x18] sm:$0xff]  ;;  %v449_v26 = vld [vmem:[#allocation2 + $0x10] sm:$0xff] }
   0xb   :  { %151 = vmatpush.bf16.msra.mxu1 %v445_v6  ;;  %v466_v18 = vld [vmem:[%s629_s2] ss:$0 sm:$0xff]  ;;  %v448_v27 = vld [vmem:[#allocation2 + $0x8] sm:$0xff]  ;;  %v462_v29 = vld [vmem:[%s634_s7 + $0x38] sm:$0xff] }
   0xc   :  { %v447_v28 = vld [vmem:[#allocation2] sm:$0xff]  ;;  %320 = vmatpush.bf16.msra.mxu3 %v462_v29  ;;  %v461_v30 = vld [vmem:[%s634_s7 + $0x30] sm:$0xff]  ;;  %v460_v31 = vld [vmem:[%s634_s7 + $0x28] sm:$0xff] }
   0xd   :  { %v459_v32 = vld [vmem:[%s634_s7 + $0x20] sm:$0xff]  ;;  %v458_v41 = vld [vmem:[%s634_s7 + $0x18] sm:$0xff]  ;;  %v457_v42 = vld [vmem:[%s634_s7 + $0x10] sm:$0xff] }
   0xe   :  { %236 = vmatpush.bf16.msra.mxu2 %v453_v14  ;;  %v467_v34 = vld [vmem:[%s631_s4] ss:$0 sm:$0xff]  ;;  %v456_v43 = vld [vmem:[%s634_s7 + $0x8] sm:$0xff] }
   0xf   :  { %152 = vmatpush.bf16.msra.mxu1 %v444_v7  ;;  %v455_v44 = vld [vmem:[%s634_s7] sm:$0xff] }
  0x10   :  { %321 = vmatpush.bf16.msra.mxu3 %v461_v30  ;;  %v468_v46 = vld [vmem:[%s633_s6] ss:$0 sm:$0xff] }
  0x11   :  { %v469_v53 = vld [vmem:[%s635_s8] ss:$0 sm:$0xff] }
  0x12   :  { %237 = vmatpush.bf16.msra.mxu2 %v452_v15 }
  0x13   :  { %153 = vmatpush.bf16.msra.mxu1 %v443_v8 }
  0x14   :  { %322 = vmatpush.bf16.msra.mxu3 %v460_v31 }
  0x16   :  { %238 = vmatpush.bf16.msra.mxu2 %v451_v16 }
  0x17   :  { %154 = vmatpush.bf16.msra.mxu1 %v442_v9 }
  0x18   :  { %323 = vmatpush.bf16.msra.mxu3 %v459_v32 }
  0x1a   :  { %239 = vmatpush.bf16.msra.mxu2 %v450_v25 }
  0x1b   :  { %155 = vmatpush.bf16.msra.mxu1 %v441_v10 }
  0x1c   :  { %324 = vmatpush.bf16.msra.mxu3 %v458_v41 }
  0x1e   :  { %240 = vmatpush.bf16.msra.mxu2 %v449_v26 }
  0x1f   :  { %156 = vmatpush.bf16.msra.mxu1 %v440_v11 }
  0x20   :  { %325 = vmatpush.bf16.msra.mxu3 %v457_v42 }
  0x22   :  { %241 = vmatpush.bf16.msra.mxu2 %v448_v27 }
  0x23   :  { %157 = vmatpush.bf16.msra.mxu1 %v439_v12 }
  0x24   :  { %326 = vmatpush.bf16.msra.mxu3 %v456_v43 }
  0x26   :  { %242 = vmatpush.bf16.msra.mxu2 %v447_v28 }
  0x28   :  { %327 = vmatpush.bf16.msra.mxu3 %v455_v44 }
  0x87   :  { %v74_v17 = vpop.f32.mrf.mxu0 }
  0x88   :  { %v75_v19 = vadd.f32 %v466_v18, %v74_v17 }
  0x8a   :  { %v79_v22 = vmax.f32 %v75_v19, 0.0 }
  0x8f   :  { %v76_v20 = vpop.f32.mrf.mxu0 }
  0x90   :  { %v77_v21 = vadd.f32 %v466_v18, %v76_v20 }
  0x92   :  { %v80_v23 = vmax.f32 %v77_v21, 0.0 }
  0x94   :  { %v81_v24 = vpack.c.bf16 %v80_v23, %v79_v22 }
  0x96   :  { %158 = vmatmul.bf16.vlgmr.msra.gmra.mxu1 %v81_v24 }
 0x113   :  { %v159_v33 = vpop.f32.mrf.mxu1 }
 0x114   :  { %v160_v35 = vadd.f32 %v467_v34, %v159_v33 }
 0x116   :  { %v164_v38 = vmax.f32 %v160_v35, 0.0 }
 0x11b   :  { %v161_v36 = vpop.f32.mrf.mxu1 }
 0x11c   :  { %v162_v37 = vadd.f32 %v467_v34, %v161_v36 }
 0x11e   :  { %v165_v39 = vmax.f32 %v162_v37, 0.0 }
 0x120   :  { %v166_v40 = vpack.c.bf16 %v165_v39, %v164_v38 }
 0x122   :  { %243 = vmatmul.bf16.vlgmr.msra.gmra.mxu2 %v166_v40 }
 0x1a5   :  { %v244_v45 = vpop.f32.mrf.mxu2 }
 0x1a6   :  { %v245_v47 = vadd.f32 %v468_v46, %v244_v45 }
 0x1a8   :  { %v249_v50 = vmax.f32 %v245_v47, 0.0 }
 0x1ad   :  { %v246_v48 = vpop.f32.mrf.mxu2 }
 0x1ae   :  { %v247_v49 = vadd.f32 %v468_v46, %v246_v48 }
 0x1b0   :  { %v250_v51 = vmax.f32 %v247_v49, 0.0 }
 0x1b2   :  { %v251_v52 = vpack.c.bf16 %v250_v51, %v249_v50 }
 0x1b4   :  { %328 = vmatmul.bf16.vlgmr.msra.gmra.mxu3 %v251_v52 }
 0x237   :  { %v329_v54 = vpop.f32.mrf.mxu3 }
 0x238   :  { %v330_v55 = vadd.f32 %v469_v53, %v329_v54 }
 0x23a   :  { %335 = vst.msk [vmem:[%s636_s9] sm:$0xff] %vm334_vm2, %v330_v55 }
 0x23f   :  { %v331_v56 = vpop.f32.mrf.mxu3 }
 0x240   :  { %v332_v57 = vadd.f32 %v469_v53, %v331_v56 }
 0x242   :  { %336 = vst.msk [vmem:[%s636_s9 + $0x8] sm:$0xff] %vm334_vm2, %v332_v57 }
 0x243   :  { %341 = vsyncpa [#allocation3], 1 }

</bundles_post_ra>
